<compile_context>
chip_gen: v7x
topology: tpu7x:2x2x1
jax: 0.10.0
libtpu: 0.0.40
codegen_flags: <defaults>
</compile_context>

<pallas_src>
import functools

import jax
import jax.numpy as jnp
from jax import lax
from jax.experimental import pallas as pl
from jax.experimental.pallas import tpu as pltpu

LN_EPS = 1e-5
INV_SQRT2 = 0.7071067811865476


def _round_up(v, a):
    return ((v + a - 1) // a) * a


# ----------------------------------------------------------------------------- kernel


def _make_ffn_kernel(num_k, matmul_dtype):
    """Build the FFN kernel for a static hidden-axis trip count `num_k`."""

    def kernel(x_ref, gamma_ref, beta_ref, w1_ref, b1_ref, w2_ref, b2_ref,
               o_ref, *scratch):
        if num_k == 1:
            # Whole hidden dim in one step: fully fused, no scratch, one lane-dense store.
            x = x_ref[...].astype(jnp.float32)
            mean = jnp.mean(x, axis=-1, keepdims=True)
            var = jnp.mean((x - mean) ** 2, axis=-1, keepdims=True)   # biased, like torch
            xn = (x - mean) * lax.rsqrt(var + LN_EPS)
            xn = (xn * gamma_ref[...] + beta_ref[...]).astype(matmul_dtype)
            h = jnp.dot(xn, w1_ref[...], preferred_element_type=jnp.float32)
            h = h + b1_ref[...]
            # exact GELU (PyTorch nn.GELU default): 0.5*x*(1+erf(x/sqrt(2)))
            h = 0.5 * h * (1.0 + lax.erf(h * INV_SQRT2))
            y = jnp.dot(h.astype(w2_ref.dtype), w2_ref[...],
                        preferred_element_type=jnp.float32)
            o_ref[...] = (y + b2_ref[...]).astype(o_ref.dtype)
            return

        xn_ref, acc_ref = scratch
        hk = pl.program_id(1)

        # Once per row tile: LayerNorm in f32, stash normalized rows in matmul dtype.
        @pl.when(hk == 0)
        def _():
            x = x_ref[...].astype(jnp.float32)
            mean = jnp.mean(x, axis=-1, keepdims=True)
            var = jnp.mean((x - mean) ** 2, axis=-1, keepdims=True)
            xn = (x - mean) * lax.rsqrt(var + LN_EPS)
            xn_ref[...] = (xn * gamma_ref[...] + beta_ref[...]).astype(xn_ref.dtype)

        # Linear(dim -> hidden tile), GELU, Linear(hidden tile -> dim) partial product.
        h = jnp.dot(xn_ref[...], w1_ref[...], preferred_element_type=jnp.float32)
        h = h + b1_ref[...]
        h = 0.5 * h * (1.0 + lax.erf(h * INV_SQRT2))
        partial = jnp.dot(h.astype(w2_ref.dtype), w2_ref[...],
                          preferred_element_type=jnp.float32)

        @pl.when(hk == 0)
        def _():
            acc_ref[...] = partial                      # first tile: no zero-init pass

        @pl.when((hk > 0) & (hk < num_k - 1))
        def _():
            acc_ref[...] += partial

        # Fused epilogue: last hidden tile goes straight to the lane-dense output store.
        @pl.when(hk == num_k - 1)
        def _():
            o_ref[...] = (acc_ref[...] + partial + b2_ref[...]).astype(o_ref.dtype)

    return kernel


# ----------------------------------------------------------------------------- planning


def _chip_info():
    """(vmem_capacity_bytes, is_v7x) with safe fallbacks."""
    vmem_cap = None
    try:
        vmem_cap = int(getattr(pltpu.get_tpu_info(), "vmem_capacity_bytes", 0)) or None
    except Exception:
        vmem_cap = None
    kind = ""
    try:
        kind = jax.devices()[0].device_kind.lower()
    except Exception:
        pass
    is_v7 = ("v7" in kind) or ("7x" in kind)
    if vmem_cap is None or vmem_cap <= 0:
        vmem_cap = (64 if is_v7 else 128) * 1024 * 1024
    return vmem_cap, is_v7


def _plan(rows, D, Dp, H, x_itemsize, o_itemsize, m_itemsize, tm=None, th=None):
    """Pick (tm, th, vmem_limit, use_buffered3) in a generation-aware way."""
    vmem_cap, is_v7 = _chip_info()
    big_vmem = vmem_cap >= 100 * 1024 * 1024
    # 128 MiB parts (v5e/v6e): use most of VMEM -> fewer weight re-streams per row tile.
    # 64 MiB parts (v7x): stay conservative; its 3.2 TB/s HBM makes re-streaming cheap anyway.
    budget = (96 if big_vmem else 36) * 1024 * 1024
    vmem_limit = int(min(vmem_cap, (112 if big_vmem else 48) * 1024 * 1024))

    tm_align = 16 if m_itemsize < 4 else 8   # bf16 packs 16 rows / sublane group

    def est(tm_, th_, w_bufs=2):
        act = 2 * tm_ * D * x_itemsize + 2 * tm_ * Dp * o_itemsize      # x in / out (2 bufs)
        wts = w_bufs * (D * th_ + th_ * Dp) * m_itemsize                # w1/w2 tiles
        small = 2 * 4 * (2 * D + th_ + 2 * Dp)                          # gamma/beta/b1/b2
        scratch = 0 if th_ == H else (tm_ * D * m_itemsize + tm_ * Dp * 4)
        return act + wts + small + scratch

    rows_r = _round_up(rows, tm_align)
    tm_cap = min(rows_r, 2048)
    if is_v7 and rows >= 2 * tm_align:
        # 2 TensorCores on v7x: keep the "parallel" row axis at >= 2 steps when possible.
        tm_cap = min(tm_cap, _round_up(pl.cdiv(rows, 2), tm_align))

    if th is not None:
        assert H % th == 0, "user-supplied th must divide the hidden dim"

    if tm is None or th is None:
        # th == H first (weights grid-invariant, k axis collapses); then multiples of 256;
        # 128 only as a last resort.  All candidates divide H exactly.
        th_cands = ([th] if th is not None
                    else [H] + [c for c in (2048, 1024, 512, 256, 128)
                                if c < H and H % c == 0])

        def best_tm(th_):
            t = tm_cap
            while t > tm_align and est(t, th_) > budget:
                t = max(tm_align, _round_up(t // 2, tm_align))
            return t if est(t, th_) <= budget else None

        choices = [(c, best_tm(c)) for c in th_cands]
        choices = [(c, t) for c, t in choices if t is not None]
        target_tm = min(rows_r, 256)
        picked = None
        for c, t in choices:                       # ordered largest-th first
            if t >= target_tm:
                picked = (c, t)
                break
        if picked is None and choices:
            picked = max(choices, key=lambda ct: ct[1])
        if picked is None:
            picked = (th_cands[0], tm_align)       # nothing fits cleanly; keep correctness
        th_pick, tm_pick = picked
        th = th if th is not None else th_pick
        tm = tm if tm is not None else tm_pick

    assert H % th == 0, "hidden tile must divide H (reduction-axis padding is unsafe)"
    tm = max(tm_align, min(tm, _round_up(rows, tm_align)))

    num_k = pl.cdiv(H, th)
    # Deeper weight buffering (hides exposed weight DMA) only on big-VMEM parts and only
    # when the hidden axis is actually tiled.
    use_buf3 = bool(big_vmem and num_k > 1 and est(tm, th, w_bufs=3) <= budget)
    return tm, th, vmem_limit, use_buf3


# ----------------------------------------------------------------------------- wrappers


def prepare_ffn_params(gamma, beta, w1, b1, w2, b2, matmul_dtype=jnp.bfloat16):
    """One-time parameter prep (do at load time, NOT per call): cast matmul operands and
    zero-pad the output width to a multiple of 128 lanes for unmasked stores."""
    D, H = w1.shape
    Dp = _round_up(D, 128)
    gamma2 = jnp.asarray(gamma).reshape(1, D).astype(jnp.float32)
    beta2 = jnp.asarray(beta).reshape(1, D).astype(jnp.float32)
    b1_2 = jnp.asarray(b1).reshape(1, H).astype(jnp.float32)
    w2p = jnp.pad(w2, ((0, 0), (0, Dp - D))) if Dp != D else jnp.asarray(w2)
    b2p = jnp.pad(b2, (0, Dp - D)) if Dp != D else jnp.asarray(b2)
    b2_2 = b2p.reshape(1, Dp).astype(jnp.float32)
    w1m = jnp.asarray(w1).astype(matmul_dtype)
    w2m = w2p.astype(matmul_dtype)
    return (gamma2, beta2, w1m, b1_2, w2m, b2_2)


@functools.partial(jax.jit, static_argnames=("tm", "th"))
def feed_forward(x, params, *, tm=None, th=None):
    """x: (B, S, D) -> (B, S, D).  params from prepare_ffn_params."""
    gamma2, beta2, w1m, b1_2, w2m, b2_2 = params
    B, S, D = x.shape
    H = w1m.shape[1]
    Dp = w2m.shape[1]
    rows = B * S
    matmul_dtype = w1m.dtype
    x_itemsize = jnp.dtype(x.dtype).itemsize
    o_itemsize = x_itemsize
    m_itemsize = jnp.dtype(matmul_dtype).itemsize

    tm, th, vmem_limit, use_buf3 = _plan(rows, D, Dp, H, x_itemsize, o_itemsize,
                                         m_itemsize, tm=tm, th=th)
    num_i = pl.cdiv(rows, tm)
    num_k = pl.cdiv(H, th)

    x2d = x.reshape(rows, D)

    def w_spec(shape, index_map):
        if use_buf3:
            try:
                return pl.BlockSpec(shape, index_map, pipeline_mode=pl.Buffered(3))
            except TypeError:  # pipeline_mode unavailable -> default double buffering
                pass
        return pl.BlockSpec(shape, index_map)

    weight_bytes = (w1m.size + w2m.size) * m_itemsize
    stream_factor = 1 if num_k == 1 else num_i        # th == H -> weights DMA'd once
    cost = pl.CostEstimate(
        flops=2 * rows * D * H + 2 * rows * H * Dp,
        transcendentals=rows * H,
        bytes_accessed=(x2d.size * x_itemsize + rows * Dp * o_itemsize
                        + weight_bytes * stream_factor
                        + 4 * (gamma2.size + beta2.size + b1_2.size + b2_2.size)),
    )

    scratch_shapes = []
    if num_k > 1:
        scratch_shapes = [
            pltpu.VMEM((tm, D), matmul_dtype),    # normalized rows, reused across hidden tiles
            pltpu.VMEM((tm, Dp), jnp.float32),    # f32 accumulator
        ]

    out2d = pl.pallas_call(
        _make_ffn_kernel(num_k, matmul_dtype),
        out_shape=jax.ShapeDtypeStruct((rows, Dp), x.dtype),
        grid_spec=pltpu.PrefetchScalarGridSpec(
            num_scalar_prefetch=0,
            grid=(num_i, num_k),
            in_specs=[
                pl.BlockSpec((tm, D), lambda i, k: (i, 0)),      # x row tile
                pl.BlockSpec((1, D), lambda i, k: (0, 0)),       # LN gamma
                pl.BlockSpec((1, D), lambda i, k: (0, 0)),       # LN beta
                w_spec((D, th), lambda i, k: (0, k)),            # w1 hidden tile
                pl.BlockSpec((1, th), lambda i, k: (0, k)),      # b1 hidden tile
                w_spec((th, Dp), lambda i, k: (k, 0)),           # w2 hidden tile (padded cols)
                pl.BlockSpec((1, Dp), lambda i, k: (0, 0)),      # b2 (padded)
            ],
            out_specs=pl.BlockSpec((tm, Dp), lambda i, k: (i, 0)),
            scratch_shapes=scratch_shapes,
        ),
        compiler_params=pltpu.CompilerParams(
            dimension_semantics=("parallel", "arbitrary"),
            vmem_limit_bytes=vmem_limit,
        ),
        cost_estimate=cost,
    )(x2d, gamma2, beta2, w1m, b1_2, w2m, b2_2)

    return out2d[:, :D].reshape(B, S, D)


def feed_forward_ref(x, gamma, beta, w1, b1, w2, b2):
    """Plain-JAX reference for verification."""
    xf = x.astype(jnp.float32)
    mean = jnp.mean(xf, axis=-1, keepdims=True)
    var = jnp.mean((xf - mean) ** 2, axis=-1, keepdims=True)
    xn = (xf - mean) * lax.rsqrt(var + LN_EPS) * gamma + beta
    h = xn @ w1 + b1
    h = 0.5 * h * (1.0 + lax.erf(h / jnp.sqrt(2.0)))
    y = h @ w2 + b2
    return y.astype(x.dtype)


if __name__ == "__main__":
    # Module config: FeedForward(dim=32, ffn_ratio=4) -> hidden_dim = 128
    B, S, D = 2, 8, 32
    FFN_RATIO = 4
    H = int(D * FFN_RATIO)

    key = jax.random.PRNGKey(0)
    kx, kw1, kb1, kw2, kb2 = jax.random.split(key, 5)

    x = jax.random.normal(kx, (B, S, D), dtype=jnp.float32)
    gamma = jnp.ones((D,), dtype=jnp.float32)
    beta = jnp.zeros((D,), dtype=jnp.float32)
    w1 = jax.random.normal(kw1, (D, H), dtype=jnp.float32) * (1.0 / jnp.sqrt(D))
    b1 = jax.random.normal(kb1, (H,), dtype=jnp.float32) * 0.01
    w2 = jax.random.normal(kw2, (H, D), dtype=jnp.float32) * (1.0 / jnp.sqrt(H))
    b2 = jax.random.normal(kb2, (D,), dtype=jnp.float32) * 0.01

    ref = feed_forward_ref(x, gamma, beta, w1, b1, w2, b2)

    # Exact-precision path (f32 MXU operands): tight tolerance vs reference.
    params_f32 = prepare_ffn_params(gamma, beta, w1, b1, w2, b2, matmul_dtype=jnp.float32)
    out_f32 = jax.block_until_ready(feed_forward(x, params_f32))
    assert out_f32.shape == (B, S, D)
    assert jnp.allclose(out_f32, ref, atol=1e-4, rtol=1e-4), "f32 path mismatch vs reference"

    # Default perf path (bf16 MXU operands, f32 LN/GELU/accumulation): looser tolerance.
    params_bf16 = prepare_ffn_params(gamma, beta, w1, b1, w2, b2, matmul_dtype=jnp.bfloat16)
    out_bf16 = jax.block_until_ready(feed_forward(x, params_bf16))
    assert out_bf16.shape == (B, S, D)
    assert jnp.allclose(out_bf16, ref, atol=5e-2, rtol=5e-2), "bf16 path mismatch vs reference"

    print("KERNEL_OK")
</pallas_src>

<mosaic_0001>
module attributes {stable_mosaic.version = 11 : i64} {
  func.func @kernel(%arg0: i32, %arg1: i32, %arg2: memref<16x32xf32, #tpu.memory_space<vmem>>, %arg3: memref<1x32xf32, #tpu.memory_space<vmem>>, %arg4: memref<1x32xf32, #tpu.memory_space<vmem>>, %arg5: memref<32x128xf32, #tpu.memory_space<vmem>>, %arg6: memref<1x128xf32, #tpu.memory_space<vmem>>, %arg7: memref<128x128xf32, #tpu.memory_space<vmem>>, %arg8: memref<1x128xf32, #tpu.memory_space<vmem>>, %arg9: memref<16x128xf32, #tpu.memory_space<vmem>>) attributes {dimension_semantics = [#tpu.dimension_semantics<parallel>, #tpu.dimension_semantics<arbitrary>], iteration_bounds = array<i64: 1, 1>, scalar_prefetch = 0 : i64, scratch_operands = 0 : i64, tpu.core_type = #tpu.core_type<tc>, window_params = [{transform_indices = @transform_0, window_bounds = array<i64: 16, 32>}, {pipeline_mode = #tpu.pipeline_mode<synchronous>, transform_indices = @transform_1, window_bounds = array<i64: 1, 32>}, {pipeline_mode = #tpu.pipeline_mode<synchronous>, transform_indices = @transform_2, window_bounds = array<i64: 1, 32>}, {transform_indices = @transform_3, window_bounds = array<i64: 32, 128>}, {transform_indices = @transform_4, window_bounds = array<i64: 1, 128>}, {transform_indices = @transform_5, window_bounds = array<i64: 128, 128>}, {pipeline_mode = #tpu.pipeline_mode<synchronous>, transform_indices = @transform_6, window_bounds = array<i64: 1, 128>}, {transform_indices = @transform_7, window_bounds = array<i64: 16, 128>}]} {
    %c0 = arith.constant 0 : index
    %c0_0 = arith.constant 0 : index
    %0 = vector.load %arg2[%c0, %c0_0] : memref<16x32xf32, #tpu.memory_space<vmem>>, vector<16x32xf32>
    %cst = arith.constant dense<0.000000e+00> : vector<16xf32>
    %1 = vector.multi_reduction <add>, %0, %cst [1] : vector<16x32xf32> to vector<16xf32>
    %2 = vector.shape_cast %1 : vector<16xf32> to vector<16x1xf32>
    %cst_1 = arith.constant 3.200000e+01 : f32
    %3 = vector.broadcast %cst_1 : f32 to vector<16x1xf32>
    %4 = arith.divf %2, %3 : vector<16x1xf32>
    %5 = vector.broadcast %4 : vector<16x1xf32> to vector<16x32xf32>
    %6 = arith.subf %0, %5 : vector<16x32xf32>
    %7 = arith.mulf %6, %6 : vector<16x32xf32>
    %cst_2 = arith.constant dense<0.000000e+00> : vector<16xf32>
    %8 = vector.multi_reduction <add>, %7, %cst_2 [1] : vector<16x32xf32> to vector<16xf32>
    %9 = vector.shape_cast %8 : vector<16xf32> to vector<16x1xf32>
    %cst_3 = arith.constant 3.200000e+01 : f32
    %10 = vector.broadcast %cst_3 : f32 to vector<16x1xf32>
    %11 = arith.divf %9, %10 : vector<16x1xf32>
    %12 = vector.broadcast %4 : vector<16x1xf32> to vector<16x32xf32>
    %13 = arith.subf %0, %12 : vector<16x32xf32>
    %cst_4 = arith.constant 9.99999974E-6 : f32
    %14 = vector.broadcast %cst_4 : f32 to vector<16x1xf32>
    %15 = arith.addf %11, %14 : vector<16x1xf32>
    %16 = math.rsqrt %15 : vector<16x1xf32>
    %17 = vector.broadcast %16 : vector<16x1xf32> to vector<16x32xf32>
    %18 = arith.mulf %13, %17 : vector<16x32xf32>
    %c0_5 = arith.constant 0 : index
    %c0_6 = arith.constant 0 : index
    %19 = vector.load %arg3[%c0_5, %c0_6] : memref<1x32xf32, #tpu.memory_space<vmem>>, vector<1x32xf32>
    %20 = vector.broadcast %19 : vector<1x32xf32> to vector<16x32xf32>
    %21 = arith.mulf %18, %20 : vector<16x32xf32>
    %c0_7 = arith.constant 0 : index
    %c0_8 = arith.constant 0 : index
    %22 = vector.load %arg4[%c0_7, %c0_8] : memref<1x32xf32, #tpu.memory_space<vmem>>, vector<1x32xf32>
    %23 = vector.broadcast %22 : vector<1x32xf32> to vector<16x32xf32>
    %24 = arith.addf %21, %23 : vector<16x32xf32>
    %c0_9 = arith.constant 0 : index
    %c0_10 = arith.constant 0 : index
    %25 = vector.load %arg5[%c0_9, %c0_10] : memref<32x128xf32, #tpu.memory_space<vmem>>, vector<32x128xf32>
    %cst_11 = arith.constant dense<0.000000e+00> : vector<16x128xf32>
    %26 = tpu.matmul %24, %25, %cst_11 {dimension_numbers = #tpu.dot_dimension_numbers<[1], [0], [0], [1], [0, 0, 1, 1], [], []>} : vector<16x32xf32>, vector<32x128xf32>, vector<16x128xf32> -> vector<16x128xf32>
    %c0_12 = arith.constant 0 : index
    %c0_13 = arith.constant 0 : index
    %27 = vector.load %arg6[%c0_12, %c0_13] : memref<1x128xf32, #tpu.memory_space<vmem>>, vector<1x128xf32>
    %28 = vector.broadcast %27 : vector<1x128xf32> to vector<16x128xf32>
    %29 = arith.addf %26, %28 : vector<16x128xf32>
    %cst_14 = arith.constant 5.000000e-01 : f32
    %30 = vector.broadcast %cst_14 : f32 to vector<16x128xf32>
    %31 = arith.mulf %30, %29 : vector<16x128xf32>
    %cst_15 = arith.constant 0.707106769 : f32
    %32 = vector.broadcast %cst_15 : f32 to vector<16x128xf32>
    %33 = arith.mulf %29, %32 : vector<16x128xf32>
    %34 = math.erf %33 : vector<16x128xf32>
    %cst_16 = arith.constant 1.000000e+00 : f32
    %35 = vector.broadcast %cst_16 : f32 to vector<16x128xf32>
    %36 = arith.addf %35, %34 : vector<16x128xf32>
    %37 = arith.mulf %31, %36 : vector<16x128xf32>
    %c0_17 = arith.constant 0 : index
    %c0_18 = arith.constant 0 : index
    %38 = vector.load %arg7[%c0_17, %c0_18] : memref<128x128xf32, #tpu.memory_space<vmem>>, vector<128x128xf32>
    %cst_19 = arith.constant dense<0.000000e+00> : vector<16x128xf32>
    %39 = tpu.matmul %37, %38, %cst_19 {dimension_numbers = #tpu.dot_dimension_numbers<[1], [0], [0], [1], [0, 0, 1, 1], [], []>} : vector<16x128xf32>, vector<128x128xf32>, vector<16x128xf32> -> vector<16x128xf32>
    %c0_20 = arith.constant 0 : index
    %c0_21 = arith.constant 0 : index
    %40 = vector.load %arg8[%c0_20, %c0_21] : memref<1x128xf32, #tpu.memory_space<vmem>>, vector<1x128xf32>
    %41 = vector.broadcast %40 : vector<1x128xf32> to vector<16x128xf32>
    %42 = arith.addf %39, %41 : vector<16x128xf32>
    %c0_22 = arith.constant 0 : index
    %c0_23 = arith.constant 0 : index
    %43 = vector.load %arg9[%c0_22, %c0_23] : memref<16x128xf32, #tpu.memory_space<vmem>>, vector<16x128xf32>
    tpu.vector_store %arg9[%c0_22, %c0_23], %42 {strides = array<i32>} : memref<16x128xf32, #tpu.memory_space<vmem>>, vector<16x128xf32>,
    return
  }
  func.func @transform_0(%arg0: i32, %arg1: i32) -> (i32, i32) {
    %c0_i32 = arith.constant 0 : i32
    %c0_i32_0 = arith.constant 0 : i32
    return %arg0, %c0_i32 : i32, i32
  }
  func.func @transform_1(%arg0: i32, %arg1: i32) -> (i32, i32) {
    %c0_i32 = arith.constant 0 : i32
    %c0_i32_0 = arith.constant 0 : i32
    %c0_i32_1 = arith.constant 0 : i32
    return %c0_i32, %c0_i32_0 : i32, i32
  }
  func.func @transform_2(%arg0: i32, %arg1: i32) -> (i32, i32) {
    %c0_i32 = arith.constant 0 : i32
    %c0_i32_0 = arith.constant 0 : i32
    %c0_i32_1 = arith.constant 0 : i32
    return %c0_i32, %c0_i32_0 : i32, i32
  }
  func.func @transform_3(%arg0: i32, %arg1: i32) -> (i32, i32) {
    %c0_i32 = arith.constant 0 : i32
    %c0_i32_0 = arith.constant 0 : i32
    return %c0_i32, %arg1 : i32, i32
  }
  func.func @transform_4(%arg0: i32, %arg1: i32) -> (i32, i32) {
    %c0_i32 = arith.constant 0 : i32
    %c0_i32_0 = arith.constant 0 : i32
    return %c0_i32, %arg1 : i32, i32
  }
  func.func @transform_5(%arg0: i32, %arg1: i32) -> (i32, i32) {
    %c0_i32 = arith.constant 0 : i32
    %c0_i32_0 = arith.constant 0 : i32
    return %arg1, %c0_i32 : i32, i32
  }
  func.func @transform_6(%arg0: i32, %arg1: i32) -> (i32, i32) {
    %c0_i32 = arith.constant 0 : i32
    %c0_i32_0 = arith.constant 0 : i32
    %c0_i32_1 = arith.constant 0 : i32
    return %c0_i32, %c0_i32_0 : i32, i32
  }
  func.func @transform_7(%arg0: i32, %arg1: i32) -> (i32, i32) {
    %c0_i32 = arith.constant 0 : i32
    %c0_i32_0 = arith.constant 0 : i32
    return %arg0, %c0_i32 : i32, i32
  }
}

</mosaic_0001>

<bundles_post_ra>
// kernel: feed_forward.1
= control target key start
LH: loop header
LB: loop body
LE: loop exit
PB: predicated region body
PF: predicated region fallthrough
CT: control target
= control target key end

     0   :  { %12 = vsyncpa [#allocation3], 0  ;;  %s868_s0 = inlined_call_operand.hbm [shape: f32[16,32], index: 0, kind: input, shape index: {}]   ;;  %s869_s1 = inlined_call_operand.hbm [shape: f32[1,32], index: 1, kind: input, shape index: {}]   ;;  %s870_s2 = inlined_call_operand.hbm [shape: f32[1,32], index: 2, kind: input, shape index: {}]   ;;  %s871_s3 = inlined_call_operand.hbm [shape: f32[32,128], index: 3, kind: input, shape index: {}]   ;;  %s872_s4 = inlined_call_operand.hbm [shape: f32[1,128], index: 4, kind: input, shape index: {}]   ;;  %s873_s5 = inlined_call_operand.hbm [shape: f32[128,128], index: 5, kind: input, shape index: {}]   ;;  %s874_s6 = inlined_call_operand.hbm [shape: f32[1,128], index: 6, kind: input, shape index: {}]   ;;  %s875_s7 = inlined_call_operand.hbm [shape: f32[16,128], index: 7, kind: output, shape index: {}]  }
   0x1   :  { %13 = vsyncpa [#allocation6], 0 }
   0x2   :  { %14 = vsyncpa [#allocation9], 0 }
   0x3   :  { %15 = vsyncpa [#allocation12], 0 }
   0x4   :  { %16 = vsyncpa [#allocation4], 0  ;;  %s704_s24 = smov [#allocation5]   ;;  %s518_s28 = scalar_lea.hbm %s869_s1, 16 }
   0x5   :  { %s35_s25 = sshll.u32 %s704_s24, 4  ;;  %p519_p0 = scmp.ne.s32.totalorder %s869_s1, %s518_s28  ;;  %s36_s25 = int_to_ptr.vmem [resolvable:$true] %s35_s25 }
   0x6   :  { %p522_p1 = scmp.lt.u32.totalorder %s518_s28, %s869_s1 }
   0x8   :  { %p524_p2 = pnand %p522_p1, %p519_p0 }
   0xa   :  { %527 = shalt.err (!%p524_p2)
}
   0xb   :  { %s528_s10 = scalar_lea.vmem %s36_s25, 16  ;;  %s532_s11 = scalar_lea.vmem %s36_s25, 32 }
   0xc   :  { %p529_p3 = scmp.ne.s32.totalorder %s36_s25, %s528_s10  ;;  %p533_p4 = scmp.lt.s32.totalorder %s36_s25, %s36_s25 }
   0xd   :  { %p534_p5 = scmp.lt.s32.totalorder %s532_s11, %s528_s10 }
   0xf   :  { %p535_p6 = por %p534_p5, %p533_p4 }
  0x11   :  { %p536_p7 = pnand %p535_p6, %p529_p3 }
  0x13   :  { %539 = shalt.err (!%p536_p7)
}
  0x14   :  { %38 = dma.hbm_to_vmem [thread:$0]  %s869_s1, 16, %s36_s25, [#allocation6]  }
  0x15   :  { %s705_s14 = smov [#allocation8]   ;;  %s706_s16 = smov [#allocation11]  }
  0x16   :  { %s54_s15 = sshll.u32 %s705_s14, 4  ;;  %s76_s17 = sshll.u32 %s706_s16, 4  ;;  %s55_s15 = int_to_ptr.vmem [resolvable:$true] %s54_s15  ;;  %s77_s17 = int_to_ptr.vmem [resolvable:$true] %s76_s17 }
  0x17   :  { %s540_s20 = scalar_lea.hbm %s871_s3, 512 }
  0x18   :  { %p541_p8 = scmp.ne.s32.totalorder %s871_s3, %s540_s20  ;;  %p544_p9 = scmp.lt.u32.totalorder %s540_s20, %s871_s3 }
  0x1a   :  { %p546_p10 = pnand %p544_p9, %p541_p8 }
  0x1c   :  { %549 = shalt.err (!%p546_p10)
}
  0x1d   :  { %s550_s1 = scalar_lea.vmem %s55_s15, 512  ;;  %p555_p12 = scmp.lt.s32.totalorder %s55_s15, %s55_s15 }
  0x1e   :  { %p551_p11 = scmp.ne.s32.totalorder %s55_s15, %s550_s1  ;;  %p556_p13 = scmp.lt.s32.totalorder %s550_s1, %s550_s1 }
  0x20   :  { %p557_p0 = por %p556_p13, %p555_p12 }
  0x22   :  { %p558_p1 = pnand %p557_p0, %p551_p11 }
  0x24   :  { %561 = shalt.err (!%p558_p1)
}
  0x25   :  { %s707_s25 = smov 128   ;;  %s708_s26 = smov 8  }
  0x26   :  { %60 = dma.hbm_to_vmem [thread:$0]  %s871_s3, 512, %s55_s15, [#allocation9], %s707_s25, %s707_s25, %s708_s26  }
  0x27   :  { %s562_s8 = scalar_lea.hbm %s873_s5, 2048 }
  0x28   :  { %p563_p2 = scmp.ne.s32.totalorder %s873_s5, %s562_s8  ;;  %p566_p3 = scmp.lt.u32.totalorder %s562_s8, %s873_s5 }
  0x2a   :  { %p568_p4 = pnand %p566_p3, %p563_p2 }
  0x2c   :  { %571 = shalt.err (!%p568_p4)
}
  0x2d   :  { %s572_s13 = scalar_lea.vmem %s77_s17, 2048  ;;  %p577_p6 = scmp.lt.s32.totalorder %s77_s17, %s77_s17 }
  0x2e   :  { %p573_p5 = scmp.ne.s32.totalorder %s77_s17, %s572_s13  ;;  %p578_p7 = scmp.lt.s32.totalorder %s572_s13, %s572_s13 }
  0x30   :  { %p579_p8 = por %p578_p7, %p577_p6 }
  0x32   :  { %p580_p9 = pnand %p579_p8, %p573_p5 }
  0x34   :  { %583 = shalt.err (!%p580_p9)
}
  0x35   :  { %82 = dma.hbm_to_vmem [thread:$0]  %s873_s5, 2048, %s77_s17, [#allocation12], %s707_s25, %s707_s25, %s708_s26  }
  0x36   :  { %s709_s15 = smov [#allocation2]   ;;  %s710_s18 = smov [#allocation7]  }
  0x37   :  { %s22_s16 = sshll.u32 %s709_s15, 4  ;;  %s45_s19 = sshll.u32 %s710_s18, 4  ;;  %s23_s16 = int_to_ptr.vmem [resolvable:$true] %s22_s16  ;;  %s46_s19 = int_to_ptr.vmem [resolvable:$true] %s45_s19 }
  0x38   :  { %s584_s22 = scalar_lea.hbm %s868_s0, 256 }
  0x39   :  { %p585_p10 = scmp.ne.s32.totalorder %s868_s0, %s584_s22  ;;  %p588_p11 = scmp.lt.u32.totalorder %s584_s22, %s868_s0 }
  0x3b   :  { %p590_p12 = pnand %p588_p11, %p585_p10 }
  0x3d   :  { %593 = shalt.err (!%p590_p12)
}
  0x3e   :  { %s594_s5 = scalar_lea.vmem %s23_s16, 256  ;;  %p599_p0 = scmp.lt.s32.totalorder %s23_s16, %s23_s16 }
  0x3f   :  { %p595_p13 = scmp.ne.s32.totalorder %s23_s16, %s594_s5  ;;  %p600_p1 = scmp.lt.s32.totalorder %s594_s5, %s594_s5 }
  0x41   :  { %p601_p2 = por %p600_p1, %p599_p0 }
  0x43   :  { %p602_p3 = pnand %p601_p2, %p595_p13 }
  0x45   :  { %605 = shalt.err (!%p602_p3)
}
  0x46   :  { %28 = dma.hbm_to_vmem [thread:$0]  %s868_s0, 256, %s23_s16, [#allocation3], %s707_s25, %s707_s25, %s708_s26  }
  0x47   :  { %s606_s8 = scalar_lea.hbm %s870_s2, 16 }
  0x48   :  { %p607_p4 = scmp.ne.s32.totalorder %s870_s2, %s606_s8  ;;  %p610_p5 = scmp.lt.u32.totalorder %s606_s8, %s870_s2 }
  0x4a   :  { %p612_p6 = pnand %p610_p5, %p607_p4 }
  0x4c   :  { %615 = shalt.err (!%p612_p6)
}
  0x4d   :  { %s616_s13 = scalar_lea.vmem %s46_s19, 16  ;;  %s620_s3 = scalar_lea.vmem %s46_s19, 32 }
  0x4e   :  { %p617_p7 = scmp.ne.s32.totalorder %s46_s19, %s616_s13  ;;  %p621_p8 = scmp.lt.s32.totalorder %s46_s19, %s46_s19 }
  0x4f   :  { %p622_p9 = scmp.lt.s32.totalorder %s620_s3, %s616_s13 }
  0x51   :  { %p623_p10 = por %p622_p9, %p621_p8 }
  0x53   :  { %p624_p11 = pnand %p623_p10, %p617_p7 }
  0x55   :  { %627 = shalt.err (!%p624_p11)
}
  0x56   :  { %48 = dma.hbm_to_vmem [thread:$0]  %s870_s2, 16, %s46_s19, [#allocation6]  }
  0x57   :  { %s711_s15 = smov [#allocation10]   ;;  %s712_s18 = smov [#allocation13]  }
  0x58   :  { %s67_s16 = sshll.u32 %s711_s15, 4  ;;  %s89_s20 = sshll.u32 %s712_s18, 4  ;;  %s68_s16 = int_to_ptr.vmem [resolvable:$true] %s67_s16  ;;  %s90_s20 = int_to_ptr.vmem [resolvable:$true] %s89_s20 }
  0x59   :  { %s628_s23 = scalar_lea.hbm %s872_s4, 16 }
  0x5a   :  { %p629_p12 = scmp.ne.s32.totalorder %s872_s4, %s628_s23  ;;  %p632_p13 = scmp.lt.u32.totalorder %s628_s23, %s872_s4 }
  0x5c   :  { %p634_p0 = pnand %p632_p13, %p629_p12 }
  0x5e   :  { %637 = shalt.err (!%p634_p0)
}
  0x5f   :  { %s638_s2 = scalar_lea.vmem %s68_s16, 16  ;;  %s642_s19 = scalar_lea.vmem %s68_s16, 32 }
  0x60   :  { %p639_p1 = scmp.ne.s32.totalorder %s68_s16, %s638_s2  ;;  %p643_p2 = scmp.lt.s32.totalorder %s68_s16, %s68_s16 }
  0x61   :  { %p644_p3 = scmp.lt.s32.totalorder %s642_s19, %s638_s2 }
  0x63   :  { %p645_p4 = por %p644_p3, %p643_p2 }
  0x65   :  { %p646_p5 = pnand %p645_p4, %p639_p1 }
  0x67   :  { %649 = shalt.err (!%p646_p5)
}
  0x68   :  { %70 = dma.hbm_to_vmem [thread:$0]  %s872_s4, 16, %s68_s16, [#allocation9]  }
  0x69   :  { %s650_s8 = scalar_lea.hbm %s874_s6, 16 }
  0x6a   :  { %p651_p6 = scmp.ne.s32.totalorder %s874_s6, %s650_s8  ;;  %p654_p7 = scmp.lt.u32.totalorder %s650_s8, %s874_s6 }
  0x6c   :  { %p656_p8 = pnand %p654_p7, %p651_p6 }
  0x6e   :  { %659 = shalt.err (!%p656_p8)
}
  0x6f   :  { %s660_s13 = scalar_lea.vmem %s90_s20, 16  ;;  %s664_s3 = scalar_lea.vmem %s90_s20, 32 }
  0x70   :  { %p661_p9 = scmp.ne.s32.totalorder %s90_s20, %s660_s13  ;;  %p665_p10 = scmp.lt.s32.totalorder %s90_s20, %s90_s20 }
  0x71   :  { %p666_p11 = scmp.lt.s32.totalorder %s664_s3, %s660_s13 }
  0x73   :  { %p667_p12 = por %p666_p11, %p665_p10 }
  0x75   :  { %p668_p13 = pnand %p667_p12, %p661_p9 }
  0x77   :  { %671 = shalt.err (!%p668_p13)
}
  0x78   :  { %92 = dma.hbm_to_vmem [thread:$0]  %s874_s6, 16, %s90_s20, [#allocation12]  }
  0x79   :  { %694 = dma.done.wait [#allocation3], 256  }
  0x7a   :  { %695 = vsyncadd [#allocation3], 4294967040 }
  0x7b   :  { %696 = dma.done.wait [#allocation6], 32  }
  0x7c   :  { %697 = vsyncadd [#allocation6], 4294967264 }
  0x7d   :  { %698 = dma.done.wait [#allocation9], 528  }
  0x7e   :  { %699 = vsyncadd [#allocation9], 4294966768 }
  0x7f   :  { %700 = dma.done.wait [#allocation12], 2064  }
  0x80   :  { %701 = vsyncadd [#allocation12], 4294965232  ;;  %vm116_vm0 = vcmask 261120   ;;  %v114_v0 = vld [vmem:[#allocation2] sm:$0xff]  ;;  %v115_v1 = vld [vmem:[#allocation2 + $0x8] sm:$0xff]  ;;  %s713_s6 = smov [#allocation14]  }
  0x81   :  { %v117_v2 = vsel %vm116_vm0, %v114_v0, 0.0  ;;  %v120_v3 = vsel %vm116_vm0, %v115_v1, 0.0  ;;  %v162_v14 = vld [vmem:[#allocation8] sm:$0xff]  ;;  %v163_v15 = vld [vmem:[#allocation8 + $0x8] sm:$0xff]  ;;  %v164_v16 = vld [vmem:[#allocation8 + $0x10] sm:$0xff]  ;;  %s369_s14 = sshll.u32 %s713_s6, 4  ;;  %s370_s14 = int_to_ptr.vmem [resolvable:$true] %s369_s14 }
  0x82   :  { %118 = vadd.xlane.f32.xlu0 %v117_v2  ;;  %v460_v17 = vpack.c.bf16 %v163_v15, %v162_v14  ;;  %v165_v18 = vld [vmem:[#allocation8 + $0x18] sm:$0xff]  ;;  %v264_v20 = vld [vmem:[#allocation11] sm:$0xff]  ;;  %v265_v21 = vld [vmem:[#allocation11 + $0x8] sm:$0xff]  ;;  %s672_s15 = scalar_lea.vmem %s370_s14, 256  ;;  %p677_p1 = scmp.lt.s32.totalorder %s370_s14, %s370_s14 }
  0x83   :  { %v464_v19 = vpack.c.bf16 %v165_v18, %v164_v16  ;;  %v266_v22 = vld [vmem:[#allocation11 + $0x10] sm:$0xff]  ;;  %v468_v23 = vpack.c.bf16 %v265_v21, %v264_v20  ;;  %v267_v24 = vld [vmem:[#allocation11 + $0x18] sm:$0xff]  ;;  %v268_v26 = vld [vmem:[#allocation11 + $0x20] sm:$0xff]  ;;  %p673_p0 = scmp.ne.s32.totalorder %s370_s14, %s672_s15  ;;  %p678_p2 = scmp.lt.s32.totalorder %s672_s15, %s672_s15 }
  0x84   :  { %461 = vmatprep.subr.bf16.mxu0 %v460_v17  ;;  %v472_v25 = vpack.c.bf16 %v267_v24, %v266_v22  ;;  %v269_v27 = vld [vmem:[#allocation11 + $0x28] sm:$0xff]  ;;  %v384_v36 = vld [vmem:[#allocation5] ss:$0 sm:$0xff]  ;;  %v385_v38 = vld [vmem:[#allocation7] ss:$0 sm:$0xff] }
  0x85   :  { %463 = vmatpush3.bf16.msra.mxu0 %v460_v17  ;;  %469 = vmatprep.subr.bf16.mxu1 %v468_v23  ;;  %v476_v28 = vpack.c.bf16 %v269_v27, %v268_v26  ;;  %v270_v45 = vld [vmem:[#allocation11 + $0x30] sm:$0xff]  ;;  %v271_v46 = vld [vmem:[#allocation11 + $0x38] sm:$0xff]  ;;  %v272_v48 = vld [vmem:[#allocation11 + $0x40] sm:$0xff]  ;;  %p679_p3 = por %p678_p2, %p677_p1 }
  0x86   :  { %121 = vadd.xlane.f32.xlu0 %v120_v3  ;;  %465 = vmatprep.subr.bf16.mxu0 %v464_v19  ;;  %v480_v47 = vpack.c.bf16 %v271_v46, %v270_v45  ;;  %v273_v49 = vld [vmem:[#allocation11 + $0x48] sm:$0xff]  ;;  %v274_v51 = vld [vmem:[#allocation11 + $0x50] sm:$0xff]  ;;  %v275_v52 = vld [vmem:[#allocation11 + $0x58] sm:$0xff] }
  0x87   :  { %471 = vmatpush3.bf16.msra.mxu1 %v468_v23  ;;  %v484_v50 = vpack.c.bf16 %v273_v49, %v272_v48  ;;  %v488_v53 = vpack.c.bf16 %v275_v52, %v274_v51  ;;  %v276_v54 = vld [vmem:[#allocation11 + $0x60] sm:$0xff]  ;;  %v277_v55 = vld [vmem:[#allocation11 + $0x68] sm:$0xff]  ;;  %v278_v57 = vld [vmem:[#allocation11 + $0x70] sm:$0xff]  ;;  %p680_p4 = pnand %p679_p3, %p673_p0 }
  0x88   :  { %473 = vmatprep.subr.bf16.mxu1 %v472_v25  ;;  %v492_v56 = vpack.c.bf16 %v277_v55, %v276_v54  ;;  %v279_v58 = vld [vmem:[#allocation11 + $0x78] sm:$0xff] }
  0x89   :  { %467 = vmatpush3.bf16.msra.mxu0 %v464_v19  ;;  %v496_v59 = vpack.c.bf16 %v279_v58, %v278_v57  ;;  %v386_v60 = vld [vmem:[#allocation10] ss:$0 sm:$0xff] }
  0x8b   :  { %475 = vmatpush3.bf16.msra.mxu1 %v472_v25 }
  0x8c   :  { %477 = vmatprep.subr.bf16.mxu1 %v476_v28 }
  0x8f   :  { %479 = vmatpush3.bf16.msra.mxu1 %v476_v28 }
  0x90   :  { %481 = vmatprep.subr.bf16.mxu1 %v480_v47 }
  0x93   :  { %483 = vmatpush3.bf16.msra.mxu1 %v480_v47 }
  0x94   :  { %485 = vmatprep.subr.bf16.mxu1 %v484_v50 }
  0x97   :  { %487 = vmatpush3.bf16.msra.mxu1 %v484_v50 }
  0x98   :  { %489 = vmatprep.subr.bf16.mxu1 %v488_v53 }
  0x9b   :  { %491 = vmatpush3.bf16.msra.mxu1 %v488_v53 }
  0x9c   :  { %493 = vmatprep.subr.bf16.mxu1 %v492_v56 }
  0x9f   :  { %495 = vmatpush3.bf16.msra.mxu1 %v492_v56 }
  0xa0   :  { %497 = vmatprep.subr.bf16.mxu1 %v496_v59 }
  0xa3   :  { %499 = vmatpush3.bf16.msra.mxu1 %v496_v59 }
 0x10f   :  { %v119_v4 = vpop.xlane.xlu0 %118 }
 0x110   :  { %v124_v5 = vmul.f32 0.03125, %v119_v4 }
 0x112   :  { %v126_v6 = vsub.f32 %v114_v0, %v124_v5 }
 0x113   :  { %v122_v7 = vpop.xlane.xlu0 %121 }
 0x114   :  { %v125_v8 = vmul.f32 0.03125, %v122_v7  ;;  %v128_v9 = vmul.f32 %v126_v6, %v126_v6 }
 0x116   :  { %v127_v10 = vsub.f32 %v115_v1, %v125_v8  ;;  %v130_v11 = vsel %vm116_vm0, %v128_v9, 0.0 }
 0x117   :  { %131 = vadd.xlane.f32.xlu1 %v130_v11  ;;  %v389_v11 = vld [vmem:[#allocation13] ss:$0 sm:$0xff] }
 0x118   :  { %v129_v12 = vmul.f32 %v127_v10, %v127_v10 }
 0x11a   :  { %v133_v13 = vsel %vm116_vm0, %v129_v12, 0.0 }
 0x11b   :  { %134 = vadd.xlane.f32.xlu1 %v133_v13 }
 0x1a4   :  { %v132_v29 = vpop.xlane.xlu1 %131 }
 0x1a5   :  { %v136_v30 = vmul.f32 0.03125, %v132_v29 }
 0x1a7   :  { %v138_v31 = vadd.f32 1e-05, %v136_v30 }
 0x1a8   :  { %v135_v32 = vpop.xlane.xlu1 %134 }
 0x1a9   :  { %510 = vrsqrt.f32 %v138_v31  ;;  %v137_v33 = vmul.f32 0.03125, %v135_v32 }
 0x1ab   :  { %v139_v34 = vadd.f32 1e-05, %v137_v33 }
 0x1ad   :  { %512 = vrsqrt.f32 %v139_v34 }
 0x1b3   :  { %v511_v35 = vpop.eup %510 }
 0x1b4   :  { %v142_v37 = vmul.f32 %v511_v35, %v126_v6 }
 0x1b6   :  { %v151_v39 = vmul.f32 %v384_v36, %v142_v37 }
 0x1b7   :  { %v513_v40 = vpop.eup %512 }
 0x1b8   :  { %v143_v41 = vmul.f32 %v513_v40, %v127_v10  ;;  %v160_v42 = vadd.f32 %v385_v38, %v151_v39 }
 0x1ba   :  { %v152_v43 = vmul.f32 %v384_v36, %v143_v41  ;;  %422 = vmatprep.mubr.msk.f32.mxu0 %vm116_vm0, %v160_v42 }
 0x1bc   :  { %v161_v44 = vadd.f32 %v385_v38, %v152_v43 }
 0x1be   :  { %423 = vmatmul.mubr.msk.f32.vlgmr.msra.gmra.mrb[0].mxu0 %vm116_vm0, %v161_v44 }
 0x291   :  { %v424_v61 = vpop.f32.mrb[0].mxu0 }
 0x292   :  { %v251_v62 = vadd.f32 %v424_v61, %v386_v60  ;;  %v245_v63 = vpop.f32.mrb[1].mxu0 }
 0x293   :  { %v246_v0 = vadd.f32 %v386_v60, %v245_v63 }
 0x294   :  { %v257_v1 = vmul.f32 0.70710677, %v251_v62  ;;  %v255_v8 = vmul.f32 0.5, %v251_v62 }
 0x295   :  { %v256_v2 = vmul.f32 0.70710677, %v246_v0  ;;  %v254_v6 = vmul.f32 0.5, %v246_v0 }
 0x296   :  { %514 = verf.f32 %v257_v1 }
 0x297   :  { %516 = verf.f32 %v256_v2 }
 0x2a0   :  { %v515_v3 = vpop.eup %514 }
 0x2a1   :  { %v517_v4 = vpop.eup %516  ;;  %v261_v5 = vadd.f32 1.0, %v515_v3 }
 0x2a2   :  { %v260_v7 = vadd.f32 1.0, %v517_v4 }
 0x2a3   :  { %v263_v10 = vmul.f32 %v261_v5, %v255_v8 }
 0x2a4   :  { %v262_v9 = vmul.f32 %v260_v7, %v254_v6 }
 0x2a6   :  { %457 = vmatprep.mubr.f32.mxu1 %v262_v9 }
 0x2a7   :  { %458 = vmatmul.mubr.f32.vlgmr.msra.gmra.mrb[0].mxu1 %v263_v10 }
 0x37a   :  { %v459_v12 = vpop.f32.mrb[0].mxu1 }
 0x37b   :  { %v359_v13 = vadd.f32 %v459_v12, %v389_v11  ;;  %v353_v14 = vpop.f32.mrb[1].mxu1 }
 0x37c   :  { %v354_v15 = vadd.f32 %v389_v11, %v353_v14 }
 0x37d   :  { %363 = vst [vmem:[#allocation14 + $0x8] sm:$0xff] %v359_v13 }
 0x37e   :  { %362 = vst [vmem:[#allocation14] sm:$0xff] %v354_v15 }
 0x37f   :  { %683 = shalt.err (!%p680_p4)
}
 0x380   :  { %s684_s20 = scalar_lea.hbm %s875_s7, 256 }
 0x381   :  { %p685_p5 = scmp.ne.s32.totalorder %s875_s7, %s684_s20  ;;  %p688_p6 = scmp.lt.u32.totalorder %s684_s20, %s875_s7 }
 0x383   :  { %p690_p7 = pnand %p688_p6, %p685_p5 }
 0x385   :  { %693 = shalt.err (!%p690_p7)
}
 0x386   :  { %375 = dma.vmem_to_hbm [thread:$0]  %s370_s14, 256, %s875_s7, [#allocation4], %s707_s25, %s707_s25, %s708_s26  }
 0x387   :  { %702 = dma.done.wait [#allocation4], 256  }
 0x388   :  { %703 = vsyncadd [#allocation4], 4294967040 }
 0x389   :  { %379 = vsyncpa [#allocation3], 1 }
 0x38a   :  { %380 = vsyncpa [#allocation6], 1 }
 0x38b   :  { %381 = vsyncpa [#allocation9], 1 }
 0x38c   :  { %382 = vsyncpa [#allocation12], 1 }
 0x38d   :  { %383 = vsyncpa [#allocation4], 1 }

</bundles_post_ra>
